<compile_context>
chip_gen: v5e
topology: v5e:2x2
jax: 0.10.0
libtpu: 0.0.40
codegen_flags: <defaults>
</compile_context>

<pallas_src>
import jax
import jax.numpy as jnp
from jax.experimental import pallas as pl
from jax.experimental.pallas import tpu as pltpu


def _linear_kernel(x_ref, w_ref, b_ref, o_ref):
    # x_ref: (TM, F), w_ref: (F, Cp) pre-transposed, b_ref: (1, Cp) f32.
    acc = jnp.dot(x_ref[...], w_ref[...], preferred_element_type=jnp.float32)
    o_ref[...] = (acc + b_ref[...]).astype(o_ref.dtype)


def _pallas_linear(x, w_t, b2d, *, tm, cp, vmem_limit, resident_buffer_count):
    B, F = x.shape

    if resident_buffer_count == 1:
        def const_spec(shape):
            # Constant index_map -> never re-DMA'd; a single buffer is enough.
            return pl.BlockSpec(shape, lambda i: (0, 0), pipeline_mode=pl.Buffered(1))
    else:
        def const_spec(shape):
            return pl.BlockSpec(shape, lambda i: (0, 0))

    return pl.pallas_call(
        _linear_kernel,
        out_shape=jax.ShapeDtypeStruct((B, cp), jnp.float32),
        grid=(pl.cdiv(B, tm),),
        in_specs=[
            pl.BlockSpec((tm, F), lambda i: (i, 0)),   # streamed x tiles
            const_spec((F, cp)),                       # resident W^T
            const_spec((1, cp)),                       # resident bias
        ],
        out_specs=pl.BlockSpec((tm, cp), lambda i: (i, 0)),
        compiler_params=pltpu.CompilerParams(
            dimension_semantics=("parallel",),
            vmem_limit_bytes=vmem_limit,
        ),
    )(x, w_t, b2d)


def logistic_regression_forward(x, weight, bias, *, batch_tile=1024,
                                stream_dtype=None, use_pallas=None):
    """Forward pass of nn.Linear(n_features, n_classes): x @ W^T + b.

    Args:
      x:      (B, n_features)
      weight: (n_classes, n_features)  (PyTorch layout)
      bias:   (n_classes,)
    Returns:
      (B, n_classes) float32 logits.
    """
    B, F = x.shape
    C = weight.shape[0]

    if use_pallas is None:
        # Tiny problems: pallas_call fixed overhead + lane padding loses to plain XLA.
        use_pallas = (B >= 64) and (B * F * C >= (1 << 20))
    if not use_pallas:
        return (x.astype(jnp.float32) @ weight.astype(jnp.float32).T
                + bias.astype(jnp.float32))

    # Lane-dense class dim: 256 padding for large C (v6e/v7x MXU width), 128 otherwise.
    lane = 256 if C > 128 else 128
    Cp = lane * pl.cdiv(C, lane)

    # Optional bf16 streaming of the HBM-dominant operands; accumulation stays f32.
    x_s = x if stream_dtype is None else x.astype(stream_dtype)
    w_s = weight if stream_dtype is None else weight.astype(stream_dtype)

    # One-time transpose/pad of W to (F, Cp): O(C*F) HBM, negligible vs x traffic.
    w_t = w_s.T
    if Cp != C:
        w_t = jnp.pad(w_t, ((0, 0), (0, Cp - C)))
    b2d = (bias if Cp == C else jnp.pad(bias, (0, Cp - C)))
    b2d = b2d.astype(jnp.float32).reshape(1, Cp)

    # Batch tile: multiple of 8 sublanes; NO padded copy of x (uneven last tile is
    # masked by Pallas and the garbage rows only feed output rows we slice away).
    TM = min(batch_tile, 8 * pl.cdiv(B, 8))
    if pl.cdiv(B, TM) < 2 and B >= 16:
        # v7x megacore: ensure >= 2 parallel grid steps so both TensorCores get work.
        TM = 8 * pl.cdiv(pl.cdiv(B, 2), 8)

    # Physical VMEM: 128 MiB on v5e/v6e, 64 MiB on v7x; leave Mosaic scratch headroom.
    try:
        phys_vmem = int(pltpu.get_tpu_info().vmem_capacity_bytes)
    except Exception:
        phys_vmem = 64 << 20   # conservative (v7x) if query unavailable
    cap = max(phys_vmem - (12 << 20), 16 << 20)

    x_bytes = jnp.dtype(x_s.dtype).itemsize
    w_bytes = jnp.dtype(w_t.dtype).itemsize

    def footprint(tm):
        # 2x buffers for streamed x / out tiles; budget W/bias at 2x as well so the
        # double-buffered fallback path is also guaranteed to fit.
        return (2 * tm * F * x_bytes + 2 * tm * Cp * 4
                + 2 * F * Cp * w_bytes + 2 * Cp * 4)

    while TM > 8 and footprint(TM) > cap:
        TM = max(8, ((TM // 2) + 7) // 8 * 8)

    vmem_limit = int(min(max(int(1.3 * footprint(TM)), 16 << 20), cap))

    kwargs = dict(tm=TM, cp=Cp, vmem_limit=vmem_limit)
    try:
        out = _pallas_linear(x_s, w_t, b2d, resident_buffer_count=1, **kwargs)
    except Exception:
        # Older JAX without Buffered(1) support on pallas_call BlockSpecs.
        out = _pallas_linear(x_s, w_t, b2d, resident_buffer_count=2, **kwargs)

    return out[:, :C]


if __name__ == "__main__":
    key = jax.random.PRNGKey(0)

    def init_params(kw, kb, n_features, n_classes):
        # Mimic nn.Linear default init: uniform +/- 1/sqrt(fan_in).
        bound = 1.0 / jnp.sqrt(jnp.float32(n_features))
        w = jax.random.uniform(kw, (n_classes, n_features), jnp.float32, -bound, bound)
        b = jax.random.uniform(kb, (n_classes,), jnp.float32, -bound, bound)
        return w, b

    k1, k2, k3, k4, k5, k6 = jax.random.split(key, 6)

    # Case 1: module-consistent tiny shapes (batch=8, n_features=32, n_classes=10),
    # forced through the Pallas path so the kernel itself is exercised.
    B1, F1, C1 = 8, 32, 10
    w1, b1 = init_params(k2, k3, F1, C1)
    x1 = jax.random.normal(k1, (B1, F1), jnp.float32)
    out1 = jax.block_until_ready(
        logistic_regression_forward(x1, w1, b1, use_pallas=True))
    ref1 = x1 @ w1.T + b1
    assert out1.shape == (B1, C1)
    assert jnp.allclose(out1, ref1, atol=1e-5, rtol=1e-5)

    # Case 2: multi-tile grid with an uneven last batch tile (no padded copy of x).
    B2, F2, C2 = 200, 128, 10
    w2, b2 = init_params(k5, k6, F2, C2)
    x2 = jax.random.normal(k4, (B2, F2), jnp.float32)
    out2 = jax.block_until_ready(
        logistic_regression_forward(x2, w2, b2, batch_tile=64, use_pallas=True))
    ref2 = x2 @ w2.T + b2
    assert out2.shape == (B2, C2)
    assert jnp.allclose(out2, ref2, atol=1e-4, rtol=1e-4)

    # Auto mode: tiny shapes take the plain-XLA fallback (no regression on small case).
    out3 = jax.block_until_ready(logistic_regression_forward(x1, w1, b1))
    assert jnp.allclose(out3, ref1, atol=1e-5, rtol=1e-5)

    print("KERNEL_OK")
</pallas_src>

<mosaic_0001>
module attributes {stable_mosaic.version = 11 : i64} {
  func.func @_linear_kernel(%arg0: i32, %arg1: memref<8x32xf32, #tpu.memory_space<vmem>>, %arg2: memref<32x128xf32, #tpu.memory_space<vmem>>, %arg3: memref<1x128xf32, #tpu.memory_space<vmem>>, %arg4: memref<8x128xf32, #tpu.memory_space<vmem>>) attributes {dimension_semantics = [#tpu.dimension_semantics<parallel>], iteration_bounds = array<i64: 1>, scalar_prefetch = 0 : i64, scratch_operands = 0 : i64, tpu.core_type = #tpu.core_type<tc>, window_params = [{transform_indices = @transform_0, window_bounds = array<i64: 8, 32>}, {pipeline_mode = #tpu.pipeline_mode<synchronous>, transform_indices = @transform_1, window_bounds = array<i64: 32, 128>}, {pipeline_mode = #tpu.pipeline_mode<synchronous>, transform_indices = @transform_2, window_bounds = array<i64: 1, 128>}, {transform_indices = @transform_3, window_bounds = array<i64: 8, 128>}]} {
    %c0 = arith.constant 0 : index
    %c0_0 = arith.constant 0 : index
    %0 = vector.load %arg1[%c0, %c0_0] : memref<8x32xf32, #tpu.memory_space<vmem>>, vector<8x32xf32>
    %c0_1 = arith.constant 0 : index
    %c0_2 = arith.constant 0 : index
    %1 = vector.load %arg2[%c0_1, %c0_2] : memref<32x128xf32, #tpu.memory_space<vmem>>, vector<32x128xf32>
    %cst = arith.constant dense<0.000000e+00> : vector<8x128xf32>
    %2 = tpu.matmul %0, %1, %cst {dimension_numbers = #tpu.dot_dimension_numbers<[1], [0], [0], [1], [0, 0, 1, 1], [], []>} : vector<8x32xf32>, vector<32x128xf32>, vector<8x128xf32> -> vector<8x128xf32>
    %c0_3 = arith.constant 0 : index
    %c0_4 = arith.constant 0 : index
    %3 = vector.load %arg3[%c0_3, %c0_4] : memref<1x128xf32, #tpu.memory_space<vmem>>, vector<1x128xf32>
    %4 = vector.broadcast %3 : vector<1x128xf32> to vector<8x128xf32>
    %5 = arith.addf %2, %4 : vector<8x128xf32>
    %c0_5 = arith.constant 0 : index
    %c0_6 = arith.constant 0 : index
    %6 = vector.load %arg4[%c0_5, %c0_6] : memref<8x128xf32, #tpu.memory_space<vmem>>, vector<8x128xf32>
    tpu.vector_store %arg4[%c0_5, %c0_6], %5 {strides = array<i32>} : memref<8x128xf32, #tpu.memory_space<vmem>>, vector<8x128xf32>,
    return
  }
  func.func @transform_0(%arg0: i32) -> (i32, i32) {
    %c0_i32 = arith.constant 0 : i32
    %c0_i32_0 = arith.constant 0 : i32
    return %arg0, %c0_i32 : i32, i32
  }
  func.func @transform_1(%arg0: i32) -> (i32, i32) {
    %c0_i32 = arith.constant 0 : i32
    %c0_i32_0 = arith.constant 0 : i32
    %c0_i32_1 = arith.constant 0 : i32
    return %c0_i32, %c0_i32_0 : i32, i32
  }
  func.func @transform_2(%arg0: i32) -> (i32, i32) {
    %c0_i32 = arith.constant 0 : i32
    %c0_i32_0 = arith.constant 0 : i32
    %c0_i32_1 = arith.constant 0 : i32
    return %c0_i32, %c0_i32_0 : i32, i32
  }
  func.func @transform_3(%arg0: i32) -> (i32, i32) {
    %c0_i32 = arith.constant 0 : i32
    %c0_i32_0 = arith.constant 0 : i32
    return %arg0, %c0_i32 : i32, i32
  }
}

module attributes {stable_mosaic.version = 11 : i64} {
  func.func @_linear_kernel(%arg0: i32, %arg1: memref<8x32xf32, #tpu.memory_space<vmem>>, %arg2: memref<32x128xf32, #tpu.memory_space<vmem>>, %arg3: memref<1x128xf32, #tpu.memory_space<vmem>>, %arg4: memref<8x128xf32, #tpu.memory_space<vmem>>) attributes {dimension_semantics = [#tpu.dimension_semantics<parallel>], iteration_bounds = array<i64: 1>, scalar_prefetch = 0 : i64, scratch_operands = 0 : i64, tpu.core_type = #tpu.core_type<tc>, window_params = [{transform_indices = @transform_0, window_bounds = array<i64: 8, 32>}, {pipeline_mode = #tpu.pipeline_mode<synchronous>, transform_indices = @transform_1, window_bounds = array<i64: 32, 128>}, {pipeline_mode = #tpu.pipeline_mode<synchronous>, transform_indices = @transform_2, window_bounds = array<i64: 1, 128>}, {transform_indices = @transform_3, window_bounds = array<i64: 8, 128>}]} {
    %c0 = arith.constant 0 : index
    %c0_0 = arith.constant 0 : index
    %0 = vector.load %arg1[%c0, %c0_0] : memref<8x32xf32, #tpu.memory_space<vmem>>, vector<8x32xf32>
    %c0_1 = arith.constant 0 : index
    %c0_2 = arith.constant 0 : index
    %1 = vector.load %arg2[%c0_1, %c0_2] : memref<32x128xf32, #tpu.memory_space<vmem>>, vector<32x128xf32>
    %cst = arith.constant dense<0.000000e+00> : vector<8x128xf32>
    %2 = tpu.matmul %0, %1, %cst {dimension_numbers = #tpu.dot_dimension_numbers<[1], [0], [0], [1], [0, 0, 1, 1], [], []>} : vector<8x32xf32>, vector<32x128xf32>, vector<8x128xf32> -> vector<8x128xf32>
    %c0_3 = arith.constant 0 : index
    %c0_4 = arith.constant 0 : index
    %3 = vector.load %arg3[%c0_3, %c0_4] : memref<1x128xf32, #tpu.memory_space<vmem>>, vector<1x128xf32>
    %4 = vector.broadcast %3 : vector<1x128xf32> to vector<8x128xf32>
    %5 = arith.addf %2, %4 : vector<8x128xf32>
    %c0_5 = arith.constant 0 : index
    %c0_6 = arith.constant 0 : index
    %6 = vector.load %arg4[%c0_5, %c0_6] : memref<8x128xf32, #tpu.memory_space<vmem>>, vector<8x128xf32>
    tpu.vector_store %arg4[%c0_5, %c0_6], %5 {strides = array<i32>} : memref<8x128xf32, #tpu.memory_space<vmem>>, vector<8x128xf32>,
    return
  }
  func.func @transform_0(%arg0: i32) -> (i32, i32) {
    %c0_i32 = arith.constant 0 : i32
    %c0_i32_0 = arith.constant 0 : i32
    return %arg0, %c0_i32 : i32, i32
  }
  func.func @transform_1(%arg0: i32) -> (i32, i32) {
    %c0_i32 = arith.constant 0 : i32
    %c0_i32_0 = arith.constant 0 : i32
    %c0_i32_1 = arith.constant 0 : i32
    return %c0_i32, %c0_i32_0 : i32, i32
  }
  func.func @transform_2(%arg0: i32) -> (i32, i32) {
    %c0_i32 = arith.constant 0 : i32
    %c0_i32_0 = arith.constant 0 : i32
    %c0_i32_1 = arith.constant 0 : i32
    return %c0_i32, %c0_i32_0 : i32, i32
  }
  func.func @transform_3(%arg0: i32) -> (i32, i32) {
    %c0_i32 = arith.constant 0 : i32
    %c0_i32_0 = arith.constant 0 : i32
    return %arg0, %c0_i32 : i32, i32
  }
}

</mosaic_0001>

<bundles_post_ra>
// kernel: tpu_custom_call.1
= control target key start
LH: loop header
LB: loop body
LE: loop exit
PB: predicated region body
PF: predicated region fallthrough
CT: control target
= control target key end

     0   :  { %8 = vsyncpa [#allocation3], 0  ;;  %s219_s0 = inlined_call_operand.hbm [shape: f32[8,32], index: 0, kind: input, shape index: {}]   ;;  %s220_s1 = inlined_call_operand.hbm [shape: f32[32,128], index: 1, kind: input, shape index: {}]   ;;  %s221_s2 = inlined_call_operand.vmem [shape: f32[1,128], index: 2, kind: input, shape index: {}]   ;;  %s222_s3 = inlined_call_operand.hbm [shape: f32[8,128], index: 3, kind: output, shape index: {}]  }
   0x1   :  { %9 = vsyncpa [#allocation6], 0 }
   0x2   :  { %10 = vsyncpa [#allocation4], 0  ;;  %s16_s14 = sshll.u32 %s219_s0, 4  ;;  %s182_s15 = smov [#allocation2]   ;;  %s17_s14 = int_to_ptr.hbm [resolvable:$true] %s16_s14 }
   0x3   :  { %s18_s16 = sshll.u32 %s182_s15, 4  ;;  %s26_s19 = sshll.u32 %s220_s1, 4  ;;  %s19_s16 = int_to_ptr.vmem [resolvable:$true] %s18_s16  ;;  %s27_s19 = int_to_ptr.hbm [resolvable:$true] %s26_s19 }
   0x4   :  { %21 = dma.hbm_to_vmem [thread:$0]  %s17_s14, 128, %s19_s16, [#allocation3]  }
   0x5   :  { %s183_s20 = smov [#allocation5]   ;;  %s184_s22 = smov 128  }
   0x6   :  { %s28_s21 = sshll.u32 %s183_s20, 4  ;;  %s185_s23 = smov 8   ;;  %s29_s21 = int_to_ptr.vmem [resolvable:$true] %s28_s21 }
   0x7   :  { %34 = dma.hbm_to_vmem [thread:$0]  %s27_s19, 512, %s29_s21, [#allocation6], %s184_s22, %s184_s22, %s185_s23  }
   0x8   :  { %176 = dma.done.wait [#allocation3], 128  }
   0x9   :  { %177 = vsyncadd [#allocation3], 4294967168 }
   0xa   :  { %178 = dma.done.wait [#allocation6], 512  }
   0xb   :  { %179 = vsyncadd [#allocation6], 4294966784  ;;  %v49_v0 = vld [vmem:[#allocation5 + $0x18] sm:$0xff]  ;;  %v48_v1 = vld [vmem:[#allocation5 + $0x10] sm:$0xff]  ;;  %vm54_vm0 = vcmask 261120   ;;  %s186_s24 = smov [#allocation7]  }
   0xc   :  { %70 = vmatpush.msra.mxu0 %v49_v0  ;;  %v47_v2 = vld [vmem:[#allocation5 + $0x8] sm:$0xff]  ;;  %v46_v3 = vld [vmem:[#allocation5] sm:$0xff]  ;;  %v45_v4 = vld [vmem:[#allocation2] sm:$0xff]  ;;  %s84_s25 = sshll.u32 %s186_s24, 4  ;;  %s86_s28 = sshll.u32 %s222_s3, 4  ;;  %s85_s25 = int_to_ptr.vmem [resolvable:$true] %s84_s25  ;;  %s87_s28 = int_to_ptr.hbm [resolvable:$true] %s86_s28 }
   0xd   :  { %v103_v5 = vld [vmem:[%s221_s2] ss:$0 sm:$0xff] }
   0xe   :  { %71 = vmatpush.msra.mxu0 %v48_v1 }
  0x10   :  { %72 = vmatpush.msra.mxu0 %v47_v2 }
  0x12   :  { %73 = vmatpush.msra.mxu0 %v46_v3 }
  0x13   :  { %97 = vmatmul.msk.f32.vlgmr.msra.gmra.mxu0 %vm54_vm0, %v45_v4 }
  0x90   :  { %v75_v6 = vpop.f32.mrf.mxu0 }
  0x91   :  { %v76_v7 = vadd.f32 %v103_v5, %v75_v6 }
  0x93   :  { %78 = vst [vmem:[#allocation7] sm:$0xff] %v76_v7 }
  0x94   :  { %89 = dma.vmem_to_hbm [thread:$0]  %s85_s25, 128, %s87_s28, [#allocation4]  }
  0x95   :  { %180 = dma.done.wait [#allocation4], 128  }
  0x96   :  { %181 = vsyncadd [#allocation4], 4294967168 }
  0x97   :  { %94 = vsyncpa [#allocation3], 1 }
  0x98   :  { %95 = vsyncpa [#allocation6], 1 }
  0x99   :  { %96 = vsyncpa [#allocation4], 1 }

// kernel: tpu_custom_call.1
= control target key start
LH: loop header
LB: loop body
LE: loop exit
PB: predicated region body
PF: predicated region fallthrough
CT: control target
= control target key end

     0   :  { %8 = vsyncpa [#allocation3], 0  ;;  %s219_s0 = inlined_call_operand.hbm [shape: f32[8,32], index: 0, kind: input, shape index: {}]   ;;  %s220_s1 = inlined_call_operand.hbm [shape: f32[32,128], index: 1, kind: input, shape index: {}]   ;;  %s221_s2 = inlined_call_operand.vmem [shape: f32[1,128], index: 2, kind: input, shape index: {}]   ;;  %s222_s3 = inlined_call_operand.hbm [shape: f32[8,128], index: 3, kind: output, shape index: {}]  }
   0x1   :  { %9 = vsyncpa [#allocation6], 0 }
   0x2   :  { %10 = vsyncpa [#allocation4], 0  ;;  %s16_s14 = sshll.u32 %s219_s0, 4  ;;  %s182_s15 = smov [#allocation2]   ;;  %s17_s14 = int_to_ptr.hbm [resolvable:$true] %s16_s14 }
   0x3   :  { %s18_s16 = sshll.u32 %s182_s15, 4  ;;  %s26_s19 = sshll.u32 %s220_s1, 4  ;;  %s19_s16 = int_to_ptr.vmem [resolvable:$true] %s18_s16  ;;  %s27_s19 = int_to_ptr.hbm [resolvable:$true] %s26_s19 }
   0x4   :  { %21 = dma.hbm_to_vmem [thread:$0]  %s17_s14, 128, %s19_s16, [#allocation3]  }
   0x5   :  { %s183_s20 = smov [#allocation5]   ;;  %s184_s22 = smov 128  }
   0x6   :  { %s28_s21 = sshll.u32 %s183_s20, 4  ;;  %s185_s23 = smov 8   ;;  %s29_s21 = int_to_ptr.vmem [resolvable:$true] %s28_s21 }
   0x7   :  { %34 = dma.hbm_to_vmem [thread:$0]  %s27_s19, 512, %s29_s21, [#allocation6], %s184_s22, %s184_s22, %s185_s23  }
   0x8   :  { %176 = dma.done.wait [#allocation3], 128  }
   0x9   :  { %177 = vsyncadd [#allocation3], 4294967168 }
   0xa   :  { %178 = dma.done.wait [#allocation6], 512  }
   0xb   :  { %179 = vsyncadd [#allocation6], 4294966784  ;;  %v49_v0 = vld [vmem:[#allocation5 + $0x18] sm:$0xff]  ;;  %v48_v1 = vld [vmem:[#allocation5 + $0x10] sm:$0xff]  ;;  %vm54_vm0 = vcmask 261120   ;;  %s186_s24 = smov [#allocation7]  }
   0xc   :  { %70 = vmatpush.msra.mxu0 %v49_v0  ;;  %v47_v2 = vld [vmem:[#allocation5 + $0x8] sm:$0xff]  ;;  %v46_v3 = vld [vmem:[#allocation5] sm:$0xff]  ;;  %v45_v4 = vld [vmem:[#allocation2] sm:$0xff]  ;;  %s84_s25 = sshll.u32 %s186_s24, 4  ;;  %s86_s28 = sshll.u32 %s222_s3, 4  ;;  %s85_s25 = int_to_ptr.vmem [resolvable:$true] %s84_s25  ;;  %s87_s28 = int_to_ptr.hbm [resolvable:$true] %s86_s28 }
   0xd   :  { %v103_v5 = vld [vmem:[%s221_s2] ss:$0 sm:$0xff] }
   0xe   :  { %71 = vmatpush.msra.mxu0 %v48_v1 }
  0x10   :  { %72 = vmatpush.msra.mxu0 %v47_v2 }
  0x12   :  { %73 = vmatpush.msra.mxu0 %v46_v3 }
  0x13   :  { %97 = vmatmul.msk.f32.vlgmr.msra.gmra.mxu0 %vm54_vm0, %v45_v4 }
  0x90   :  { %v75_v6 = vpop.f32.mrf.mxu0 }
  0x91   :  { %v76_v7 = vadd.f32 %v103_v5, %v75_v6 }
  0x93   :  { %78 = vst [vmem:[#allocation7] sm:$0xff] %v76_v7 }
  0x94   :  { %89 = dma.vmem_to_hbm [thread:$0]  %s85_s25, 128, %s87_s28, [#allocation4]  }
  0x95   :  { %180 = dma.done.wait [#allocation4], 128  }
  0x96   :  { %181 = vsyncadd [#allocation4], 4294967168 }
  0x97   :  { %94 = vsyncpa [#allocation3], 1 }
  0x98   :  { %95 = vsyncpa [#allocation6], 1 }
  0x99   :  { %96 = vsyncpa [#allocation4], 1 }

</bundles_post_ra>
